<compile_context>
chip_gen: v5e
topology: v5e:2x2
jax: 0.10.0
libtpu: 0.0.40
codegen_flags: <defaults>
</compile_context>

<pallas_src>
import functools

import jax
import jax.numpy as jnp
from jax.experimental import pallas as pl
from jax.experimental.pallas import tpu as pltpu

BN_EPS = 1e-5     # torch.nn.BatchNorm1d default
LANE = 128        # TPU lane width


def _round_up(n, m):
    return ((n + m - 1) // m) * m


# ---------------------------------------------------------------------------
# Per-layer kernel: one row tile of  A_hat  per grid step.
#   h_new_rows = [h_rows +] SiLU( (A_rows @ H) @ W * scale + shift )
#   (last layer additionally applies out_proj row-wise)
# ---------------------------------------------------------------------------
def _gcn_layer_kernel(*refs, residual, fuse_out, pre_projected):
    refs = list(refs)
    a_ref = refs.pop(0)                                   # [tm, Np]  bf16 A_hat rows
    hb_ref = refs.pop(0)                                  # [Np, dF]  bf16 full features
    hres_ref = refs.pop(0) if residual else None          # [tm, hp]  f32 residual rows
    w_ref = None if pre_projected else refs.pop(0)        # [dF, hp]  bf16
    ss_ref = refs.pop(0)                                  # [2,  hp]  f32 (scale, shift)
    wo_ref = refs.pop(0) if fuse_out else None            # [hp, op]  bf16
    bo_ref = refs.pop(0) if fuse_out else None            # [1,  op]  f32
    o_ref = refs.pop(0)

    # The N^2 contraction: streamed A row tile against the resident feature matrix.
    ah = jnp.dot(a_ref[...], hb_ref[...], preferred_element_type=jnp.float32)
    if pre_projected:
        z = ah                                            # features already @ W0
    else:
        z = jnp.dot(ah.astype(jnp.bfloat16), w_ref[...],
                    preferred_element_type=jnp.float32)

    ss = ss_ref[...]
    z = z * ss[0:1, :] + ss[1:2, :]          # GCN bias + BatchNorm (eval) folded FMA
    h_new = z * jax.nn.sigmoid(z)            # SiLU; dropout = identity in eval mode
    if residual:
        h_new = hres_ref[...] + h_new

    if fuse_out:                             # out_proj fused into the last layer
        o_ref[...] = (jnp.dot(h_new.astype(jnp.bfloat16), wo_ref[...],
                              preferred_element_type=jnp.float32) + bo_ref[...])
    else:
        o_ref[...] = h_new


# ---------------------------------------------------------------------------
# Parameter packing (done ONCE): pad feature dims to 128, cast weights to bf16,
# fold GCN bias + eval BatchNorm into per-channel scale/shift.
# ---------------------------------------------------------------------------
def pack_gnn_params(params):
    layers = params["layers"]
    num_layers = len(layers)
    din, hid = layers[0]["w"].shape
    dout = params["out_proj"]["w"].shape[1]
    dp, hp, op = _round_up(din, LANE), _round_up(hid, LANE), _round_up(dout, LANE)

    def pad2(w, rp, cp):
        r, c = w.shape
        return jnp.pad(w, ((0, rp - r), (0, cp - c)))

    def fold_bn(layer):
        # BN(z + b) = z*scale + shift;  scale = gamma*rsqrt(var+eps),
        # shift = (b - mean)*scale + beta.  Padded lanes are 0 -> stay 0.
        scale = layer["gamma"] * jax.lax.rsqrt(layer["var"] + BN_EPS)
        shift = (layer["b"] - layer["mean"]) * scale + layer["beta"]
        packed = jnp.stack([scale, shift]).astype(jnp.float32)      # [2, hid]
        return jnp.pad(packed, ((0, 0), (0, hp - hid)))

    ws = [pad2(layers[0]["w"], dp, hp).astype(jnp.bfloat16)]
    ws += [pad2(l["w"], hp, hp).astype(jnp.bfloat16) for l in layers[1:]]
    sss = [fold_bn(l) for l in layers]
    wo = pad2(params["out_proj"]["w"], hp, op).astype(jnp.bfloat16)
    bo = jnp.pad(params["out_proj"]["b"], (0, op - dout)).reshape(1, op).astype(jnp.float32)
    return dict(ws=ws, sss=sss, wo=wo, bo=bo,
                dims=(din, hid, dout, dp, hp, op), num_layers=num_layers)


# ---------------------------------------------------------------------------
# Graph preprocessing (plain JAX, once per graph):
#   A_hat = D^-1/2 (A + I) D^-1/2,  then pad to 128-multiple and cast bf16.
# ---------------------------------------------------------------------------
def build_gcn_adjacency(edge_index, num_nodes):
    src, dst = edge_index[0], edge_index[1]
    a = jnp.zeros((num_nodes, num_nodes), jnp.float32)
    a = a.at[dst, src].add(1.0)                     # messages flow src -> dst
    a = a + jnp.eye(num_nodes, dtype=jnp.float32)   # self loops
    deg = a.sum(axis=1)
    dinv = jax.lax.rsqrt(jnp.maximum(deg, 1e-12))
    return a * dinv[:, None] * dinv[None, :]


def prepare_adjacency(a_hat):
    # Hoisted out of the forward: pad the node dim to a LANE multiple (lane-dense
    # A_hat) and cast to bf16 once per graph, not per call.
    n = a_hat.shape[0]
    np_ = _round_up(n, LANE)
    return jnp.pad(a_hat, ((0, np_ - n), (0, np_ - n))).astype(jnp.bfloat16)


# ---------------------------------------------------------------------------
# Forward: one row-tiled pallas_call per layer (row axis "parallel").
# ---------------------------------------------------------------------------
def gnn_forward(packed, x, a_p, *, row_tile=256):
    din, hid, dout, dp, hp, op = packed["dims"]
    num_layers = packed["num_layers"]
    n = x.shape[0]
    np_ = a_p.shape[0]
    tm = row_tile if np_ % row_tile == 0 else LANE
    grid = (np_ // tm,)

    # Layer-0 matmul order: contract A against the smaller padded feature dim.
    pre_projected = dp > hp
    x_pad = jnp.pad(x, ((0, np_ - n), (0, dp - din)))
    if pre_projected:
        h_in_b = jnp.dot(x_pad.astype(jnp.bfloat16), packed["ws"][0],
                         preferred_element_type=jnp.float32).astype(jnp.bfloat16)
        d_f = hp
    else:
        h_in_b = x_pad.astype(jnp.bfloat16)
        d_f = dp

    h_f32 = None
    for l in range(num_layers):
        is_first = l == 0
        is_last = l == num_layers - 1
        residual = not is_first
        skip_w = is_first and pre_projected
        if not is_first:
            h_in_b = h_f32.astype(jnp.bfloat16)
            d_f = hp

        args = [a_p, h_in_b]
        in_specs = [pl.BlockSpec((tm, np_), lambda i: (i, 0)),      # streamed A rows
                    pl.BlockSpec((np_, d_f), lambda i: (0, 0))]     # resident features
        if residual:
            args.append(h_f32)
            in_specs.append(pl.BlockSpec((tm, hp), lambda i: (i, 0)))
        if not skip_w:
            args.append(packed["ws"][l])
            in_specs.append(pl.BlockSpec((d_f, hp), lambda i: (0, 0)))
        args.append(packed["sss"][l])
        in_specs.append(pl.BlockSpec((2, hp), lambda i: (0, 0)))
        if is_last:
            args += [packed["wo"], packed["bo"]]
            in_specs += [pl.BlockSpec((hp, op), lambda i: (0, 0)),
                         pl.BlockSpec((1, op), lambda i: (0, 0))]
        out_cols = op if is_last else hp

        # Explicit per-step VMEM residency (x2 for double buffers); raise the
        # scoped limit when needed but never above v7x's 64 MiB physical VMEM.
        est = 2 * (tm * np_ * 2 + np_ * d_f * 2 + d_f * hp * 2 + 2 * hp * 4
                   + tm * out_cols * 4)
        if residual:
            est += 2 * tm * hp * 4
        if is_last:
            est += 2 * (hp * op * 2 + op * 4)
        vmem_limit = int(min(max(2 * est, 32 * 2 ** 20), 64 * 2 ** 20))

        kernel = functools.partial(_gcn_layer_kernel, residual=residual,
                                   fuse_out=is_last, pre_projected=skip_w)
        result = pl.pallas_call(
            kernel,
            grid=grid,
            out_shape=jax.ShapeDtypeStruct((np_, out_cols), jnp.float32),
            in_specs=in_specs,
            out_specs=pl.BlockSpec((tm, out_cols), lambda i: (i, 0)),
            compiler_params=pltpu.CompilerParams(
                dimension_semantics=("parallel",),   # v7x: shard row tiles across TCs
                vmem_limit_bytes=vmem_limit),
        )(*args)

        if is_last:
            return result[:n, :dout]
        h_f32 = result


# ---------------------------------------------------------------------------
# Deterministic parameter init (mirrors torch module shapes; BN running stats
# randomized so the BN path is actually exercised).
# ---------------------------------------------------------------------------
def init_gnn_params(key, input_dim, hidden_dim, output_dim, num_layers):
    layers = []
    din = input_dim
    for _ in range(num_layers):
        key, kw, kb, kg, ke, km, kv = jax.random.split(key, 7)
        bound = 1.0 / jnp.sqrt(din)
        layers.append(dict(
            w=jax.random.uniform(kw, (din, hidden_dim), jnp.float32, -bound, bound),
            b=jax.random.uniform(kb, (hidden_dim,), jnp.float32, -bound, bound),
            gamma=1.0 + 0.1 * jax.random.normal(kg, (hidden_dim,), jnp.float32),
            beta=0.1 * jax.random.normal(ke, (hidden_dim,), jnp.float32),
            mean=0.1 * jax.random.normal(km, (hidden_dim,), jnp.float32),
            var=jax.random.uniform(kv, (hidden_dim,), jnp.float32, 0.5, 1.5),
        ))
        din = hidden_dim
    key, kw, kb = jax.random.split(key, 3)
    bound = 1.0 / jnp.sqrt(hidden_dim)
    out_proj = dict(
        w=jax.random.uniform(kw, (hidden_dim, output_dim), jnp.float32, -bound, bound),
        b=jax.random.uniform(kb, (output_dim,), jnp.float32, -bound, bound),
    )
    return dict(layers=layers, out_proj=out_proj)


# Pure-JAX reference mirroring the kernel's math (bf16 MXU operands, (A@H)@W
# order, folded scale/shift, f32 residual chain).
def gnn_reference_mirror(params, x, a_hat):
    def mm(a, b):
        return jnp.dot(a.astype(jnp.bfloat16), b.astype(jnp.bfloat16),
                       preferred_element_type=jnp.float32)

    def layer_fn(h_in, layer):
        z = mm(mm(a_hat, h_in), layer["w"])
        scale = layer["gamma"] * jax.lax.rsqrt(layer["var"] + BN_EPS)
        shift = (layer["b"] - layer["mean"]) * scale + layer["beta"]
        z = z * scale + shift
        return z * jax.nn.sigmoid(z)

    h = layer_fn(x, params["layers"][0])
    for layer in params["layers"][1:]:
        h = h + layer_fn(h, layer)
    op = params["out_proj"]
    return mm(h, op["w"]) + op["b"]


# Full-precision reference with the original PyTorch semantics.
def gnn_reference_f32(params, x, a_hat):
    def layer_fn(h, layer):
        z = a_hat @ (h @ layer["w"]) + layer["b"]
        z = ((z - layer["mean"]) * jax.lax.rsqrt(layer["var"] + BN_EPS)
             * layer["gamma"] + layer["beta"])
        return z * jax.nn.sigmoid(z)

    h = layer_fn(x, params["layers"][0])
    for layer in params["layers"][1:]:
        h = h + layer_fn(h, layer)
    op = params["out_proj"]
    return h @ op["w"] + op["b"]


if __name__ == "__main__":
    key = jax.random.PRNGKey(0)
    num_nodes, input_dim, hidden_dim, output_dim, num_layers = 12, 16, 32, 8, 3

    # Small deterministic graph: bidirectional ring + two chords.
    edges = []
    for i in range(num_nodes):
        j = (i + 1) % num_nodes
        edges += [(i, j), (j, i)]
    edges += [(0, 6), (6, 0), (3, 9), (9, 3)]
    edge_index = jnp.array(edges, dtype=jnp.int32).T          # [2, E]

    kx, kp = jax.random.split(key)
    x = jax.random.normal(kx, (num_nodes, input_dim), jnp.float32)
    params = init_gnn_params(kp, input_dim, hidden_dim, output_dim, num_layers)

    a_hat = build_gcn_adjacency(edge_index, num_nodes)
    packed = pack_gnn_params(params)      # once per model
    a_p = prepare_adjacency(a_hat)        # once per graph (pad to 128 + bf16)

    out = gnn_forward(packed, x, a_p)
    out = jax.block_until_ready(out)

    ref_mirror = gnn_reference_mirror(params, x, a_hat)   # same bf16 math / order
    ref_f32 = gnn_reference_f32(params, x, a_hat)         # full-precision semantics

    assert out.shape == (num_nodes, output_dim)
    assert jnp.allclose(out, ref_mirror, atol=1e-2, rtol=1e-2), "mismatch vs bf16 mirror"
    assert jnp.allclose(out, ref_f32, atol=1.5e-1, rtol=1.5e-1), "mismatch vs f32 reference"

    print("KERNEL_OK")
</pallas_src>

<mosaic_0001>
module attributes {stable_mosaic.version = 11 : i64} {
  func.func @_gcn_layer_kernel(%arg0: i32, %arg1: memref<128x128xbf16, #tpu.memory_space<vmem>>, %arg2: memref<128x128xbf16, #tpu.memory_space<vmem>>, %arg3: memref<128x128xbf16, #tpu.memory_space<vmem>>, %arg4: memref<2x128xf32, #tpu.memory_space<vmem>>, %arg5: memref<128x128xf32, #tpu.memory_space<vmem>>) attributes {dimension_semantics = [#tpu.dimension_semantics<parallel>], iteration_bounds = array<i64: 1>, scalar_prefetch = 0 : i64, scratch_operands = 0 : i64, tpu.core_type = #tpu.core_type<tc>, window_params = [{transform_indices = @transform_0, window_bounds = array<i64: 128, 128>}, {pipeline_mode = #tpu.pipeline_mode<synchronous>, transform_indices = @transform_1, window_bounds = array<i64: 128, 128>}, {pipeline_mode = #tpu.pipeline_mode<synchronous>, transform_indices = @transform_2, window_bounds = array<i64: 128, 128>}, {pipeline_mode = #tpu.pipeline_mode<synchronous>, transform_indices = @transform_3, window_bounds = array<i64: 2, 128>}, {transform_indices = @transform_4, window_bounds = array<i64: 128, 128>}]} {
    %c0 = arith.constant 0 : index
    %c0_0 = arith.constant 0 : index
    %0 = vector.load %arg1[%c0, %c0_0] : memref<128x128xbf16, #tpu.memory_space<vmem>>, vector<128x128xbf16>
    %c0_1 = arith.constant 0 : index
    %c0_2 = arith.constant 0 : index
    %1 = vector.load %arg2[%c0_1, %c0_2] : memref<128x128xbf16, #tpu.memory_space<vmem>>, vector<128x128xbf16>
    %cst = arith.constant dense<0.000000e+00> : vector<128x128xf32>
    %2 = tpu.matmul %0, %1, %cst {dimension_numbers = #tpu.dot_dimension_numbers<[1], [0], [0], [1], [0, 0, 1, 1], [], []>} : vector<128x128xbf16>, vector<128x128xbf16>, vector<128x128xf32> -> vector<128x128xf32>
    %3 = arith.truncf %2 : vector<128x128xf32> to vector<128x128xbf16>
    %c0_3 = arith.constant 0 : index
    %c0_4 = arith.constant 0 : index
    %4 = vector.load %arg3[%c0_3, %c0_4] : memref<128x128xbf16, #tpu.memory_space<vmem>>, vector<128x128xbf16>
    %cst_5 = arith.constant dense<0.000000e+00> : vector<128x128xf32>
    %5 = tpu.matmul %3, %4, %cst_5 {dimension_numbers = #tpu.dot_dimension_numbers<[1], [0], [0], [1], [0, 0, 1, 1], [], []>} : vector<128x128xbf16>, vector<128x128xbf16>, vector<128x128xf32> -> vector<128x128xf32>
    %c0_6 = arith.constant 0 : index
    %c0_7 = arith.constant 0 : index
    %6 = vector.load %arg4[%c0_6, %c0_7] : memref<2x128xf32, #tpu.memory_space<vmem>>, vector<2x128xf32>
    %7 = vector.extract_strided_slice %6 {offsets = [0, 0], sizes = [1, 128], strides = [1, 1]} : vector<2x128xf32> to vector<1x128xf32>
    %8 = vector.broadcast %7 : vector<1x128xf32> to vector<128x128xf32>
    %9 = arith.mulf %5, %8 : vector<128x128xf32>
    %10 = vector.extract_strided_slice %6 {offsets = [1, 0], sizes = [1, 128], strides = [1, 1]} : vector<2x128xf32> to vector<1x128xf32>
    %11 = vector.broadcast %10 : vector<1x128xf32> to vector<128x128xf32>
    %12 = arith.addf %9, %11 : vector<128x128xf32>
    %13 = arith.negf %12 : vector<128x128xf32>
    %14 = math.exp %13 : vector<128x128xf32>
    %cst_8 = arith.constant 1.000000e+00 : f32
    %15 = vector.broadcast %cst_8 : f32 to vector<128x128xf32>
    %16 = arith.addf %15, %14 : vector<128x128xf32>
    %17 = arith.divf %15, %16 : vector<128x128xf32>
    %18 = arith.mulf %12, %17 : vector<128x128xf32>
    %c0_9 = arith.constant 0 : index
    %c0_10 = arith.constant 0 : index
    %19 = vector.load %arg5[%c0_9, %c0_10] : memref<128x128xf32, #tpu.memory_space<vmem>>, vector<128x128xf32>
    tpu.vector_store %arg5[%c0_9, %c0_10], %18 {strides = array<i32>} : memref<128x128xf32, #tpu.memory_space<vmem>>, vector<128x128xf32>,
    return
  }
  func.func @transform_0(%arg0: i32) -> (i32, i32) {
    %c0_i32 = arith.constant 0 : i32
    %c0_i32_0 = arith.constant 0 : i32
    return %arg0, %c0_i32 : i32, i32
  }
  func.func @transform_1(%arg0: i32) -> (i32, i32) {
    %c0_i32 = arith.constant 0 : i32
    %c0_i32_0 = arith.constant 0 : i32
    %c0_i32_1 = arith.constant 0 : i32
    return %c0_i32, %c0_i32_0 : i32, i32
  }
  func.func @transform_2(%arg0: i32) -> (i32, i32) {
    %c0_i32 = arith.constant 0 : i32
    %c0_i32_0 = arith.constant 0 : i32
    %c0_i32_1 = arith.constant 0 : i32
    return %c0_i32, %c0_i32_0 : i32, i32
  }
  func.func @transform_3(%arg0: i32) -> (i32, i32) {
    %c0_i32 = arith.constant 0 : i32
    %c0_i32_0 = arith.constant 0 : i32
    %c0_i32_1 = arith.constant 0 : i32
    return %c0_i32, %c0_i32_0 : i32, i32
  }
  func.func @transform_4(%arg0: i32) -> (i32, i32) {
    %c0_i32 = arith.constant 0 : i32
    %c0_i32_0 = arith.constant 0 : i32
    return %arg0, %c0_i32 : i32, i32
  }
}

</mosaic_0001>

<bundles_post_ra>
// kernel: tpu_custom_call.1
= control target key start
LH: loop header
LB: loop body
LE: loop exit
PB: predicated region body
PF: predicated region fallthrough
CT: control target
= control target key end

     0   :  { %9 = vsyncpa [#allocation3], 0  ;;  %s1381_s0 = inlined_call_operand.hbm [shape: bf16[128,128], index: 0, kind: input, shape index: {}]   ;;  %s1382_s1 = inlined_call_operand.hbm [shape: bf16[128,128], index: 1, kind: input, shape index: {}]   ;;  %s1383_s2 = inlined_call_operand.hbm [shape: bf16[128,128], index: 2, kind: input, shape index: {}]   ;;  %s1384_s3 = inlined_call_operand.vmem [shape: f32[2,128], index: 3, kind: input, shape index: {}]   ;;  %s1385_s4 = inlined_call_operand.hbm [shape: f32[128,128], index: 4, kind: output, shape index: {}]  }
   0x1   :  { %10 = vsyncpa [#allocation6], 0 }
   0x2   :  { %11 = vsyncpa [#allocation4], 0  ;;  %s29_s17 = sshll.u32 %s1382_s1, 4  ;;  %s1080_s18 = smov [#allocation5]   ;;  %s30_s17 = int_to_ptr.hbm [resolvable:$true] %s29_s17 }
   0x3   :  { %s31_s19 = sshll.u32 %s1080_s18, 4  ;;  %s16_s22 = sshll.u32 %s1381_s0, 4  ;;  %s32_s19 = int_to_ptr.vmem [resolvable:$true] %s31_s19  ;;  %s17_s22 = int_to_ptr.hbm [resolvable:$true] %s16_s22 }
   0x4   :  { %s1081_s23 = smov 64   ;;  %s1082_s24 = smov 4  }
   0x5   :  { %37 = dma.hbm_to_vmem [thread:$0]  %s30_s17, 1024, %s32_s19, [#allocation6], %s1081_s23, %s1081_s23, %s1082_s24  }
   0x6   :  { %s1083_s25 = smov [#allocation2]   ;;  %s42_s29 = sshll.u32 %s1383_s2, 4  ;;  %s43_s29 = int_to_ptr.hbm [resolvable:$true] %s42_s29 }
   0x7   :  { %s18_s26 = sshll.u32 %s1083_s25, 4  ;;  %s1084_s1 = smov [#allocation7]   ;;  %s19_s26 = int_to_ptr.vmem [resolvable:$true] %s18_s26 }
   0x8   :  { %24 = dma.hbm_to_vmem [thread:$0]  %s17_s22, 1024, %s19_s26, [#allocation3], %s1081_s23, %s1081_s23, %s1082_s24  }
   0x9   :  { %s44_s30 = sshll.u32 %s1084_s1, 4  ;;  %s45_s30 = int_to_ptr.vmem [resolvable:$true] %s44_s30 }
   0xa   :  { %50 = dma.hbm_to_vmem [thread:$0]  %s43_s29, 1024, %s45_s30, [#allocation6], %s1081_s23, %s1081_s23, %s1082_s24  }
   0xb   :  { %1074 = dma.done.wait [#allocation3], 1024  }
   0xc   :  { %1075 = vsyncadd [#allocation3], 4294966272 }
   0xd   :  { %1076 = dma.done.wait [#allocation6], 2048  }
   0xe   :  { %1077 = vsyncadd [#allocation6], 4294965248  ;;  %v881_v0 = vld [vmem:[#allocation5 + $0x38] sm:$0xff]  ;;  %v880_v1 = vld [vmem:[#allocation5 + $0x30] sm:$0xff]  ;;  %s740_s8 = sshll.u32 %s1385_s4, 4  ;;  %s1086_s9 = smov 128   ;;  %s741_s8 = int_to_ptr.hbm [resolvable:$true] %s740_s8 }
   0xf   :  { %193 = vmatpush.bf16.msra.mxu0 %v881_v0  ;;  %890 = vmatpush.bf16.msra.mxu2 %v881_v0  ;;  %v879_v2 = vld [vmem:[#allocation5 + $0x28] sm:$0xff]  ;;  %v878_v3 = vld [vmem:[#allocation5 + $0x20] sm:$0xff]  ;;  %v877_v4 = vld [vmem:[#allocation5 + $0x18] sm:$0xff]  ;;  %s1087_s10 = smov 8  }
  0x10   :  { %v876_v5 = vld [vmem:[#allocation5 + $0x10] sm:$0xff]  ;;  %v875_v6 = vld [vmem:[#allocation5 + $0x8] sm:$0xff]  ;;  %v874_v7 = vld [vmem:[#allocation5] sm:$0xff] }
  0x11   :  { %v866_v8 = vld [vmem:[#allocation2] sm:$0xff]  ;;  %v867_v10 = vld [vmem:[#allocation2 + $0x8] sm:$0xff]  ;;  %v889_v12 = vld [vmem:[#allocation7 + $0x38] sm:$0xff] }
  0x12   :  { %v870_v9 = vld [vmem:[#allocation2 + $0x20] sm:$0xff]  ;;  %v871_v11 = vld [vmem:[#allocation2 + $0x28] sm:$0xff]  ;;  %314 = vmatpush.bf16.msra.mxu1 %v889_v12  ;;  %v888_v13 = vld [vmem:[#allocation7 + $0x30] sm:$0xff]  ;;  %898 = vmatpush.bf16.msra.mxu3 %v889_v12 }
  0x13   :  { %194 = vmatpush.bf16.msra.mxu0 %v880_v1  ;;  %891 = vmatpush.bf16.msra.mxu2 %v880_v1  ;;  %v887_v14 = vld [vmem:[#allocation7 + $0x28] sm:$0xff]  ;;  %v886_v15 = vld [vmem:[#allocation7 + $0x20] sm:$0xff]  ;;  %v868_v16 = vld [vmem:[#allocation2 + $0x10] sm:$0xff] }
  0x14   :  { %v872_v17 = vld [vmem:[#allocation2 + $0x30] sm:$0xff]  ;;  %v885_v18 = vld [vmem:[#allocation7 + $0x18] sm:$0xff]  ;;  %v883_v22 = vld [vmem:[#allocation7 + $0x8] sm:$0xff] }
  0x15   :  { %v869_v19 = vld [vmem:[#allocation2 + $0x18] sm:$0xff]  ;;  %v884_v21 = vld [vmem:[#allocation7 + $0x10] sm:$0xff]  ;;  %v882_v23 = vld [vmem:[#allocation7] sm:$0xff] }
  0x16   :  { %315 = vmatpush.bf16.msra.mxu1 %v888_v13  ;;  %899 = vmatpush.bf16.msra.mxu3 %v888_v13  ;;  %v873_v20 = vld [vmem:[#allocation2 + $0x38] sm:$0xff]  ;;  %v363_v48 = vld [vmem:[%s1384_s3] sm:$0x3]  ;;  %s1085_s3 = smov [#allocation8]  }
  0x17   :  { %195 = vmatpush.bf16.msra.mxu0 %v879_v2  ;;  %892 = vmatpush.bf16.msra.mxu2 %v879_v2  ;;  %v1125_v49 = vperm.slane %v363_v48, 0  ;;  %v1127_v50 = vperm.slane %v363_v48, 1  ;;  %s738_s5 = sshll.u32 %s1085_s3, 4  ;;  %s739_s5 = int_to_ptr.vmem [resolvable:$true] %s738_s5 }
  0x1a   :  { %316 = vmatpush.bf16.msra.mxu1 %v887_v14  ;;  %900 = vmatpush.bf16.msra.mxu3 %v887_v14 }
  0x1b   :  { %196 = vmatpush.bf16.msra.mxu0 %v878_v3  ;;  %893 = vmatpush.bf16.msra.mxu2 %v878_v3 }
  0x1e   :  { %317 = vmatpush.bf16.msra.mxu1 %v886_v15  ;;  %901 = vmatpush.bf16.msra.mxu3 %v886_v15 }
  0x1f   :  { %197 = vmatpush.bf16.msra.mxu0 %v877_v4  ;;  %894 = vmatpush.bf16.msra.mxu2 %v877_v4 }
  0x22   :  { %318 = vmatpush.bf16.msra.mxu1 %v885_v18  ;;  %902 = vmatpush.bf16.msra.mxu3 %v885_v18 }
  0x23   :  { %198 = vmatpush.bf16.msra.mxu0 %v876_v5  ;;  %895 = vmatpush.bf16.msra.mxu2 %v876_v5 }
  0x26   :  { %319 = vmatpush.bf16.msra.mxu1 %v884_v21  ;;  %903 = vmatpush.bf16.msra.mxu3 %v884_v21 }
  0x27   :  { %199 = vmatpush.bf16.msra.mxu0 %v875_v6  ;;  %896 = vmatpush.bf16.msra.mxu2 %v875_v6 }
  0x2a   :  { %320 = vmatpush.bf16.msra.mxu1 %v883_v22  ;;  %904 = vmatpush.bf16.msra.mxu3 %v883_v22 }
  0x2b   :  { %200 = vmatpush.bf16.msra.mxu0 %v874_v7  ;;  %897 = vmatpush.bf16.msra.mxu2 %v874_v7 }
  0x2e   :  { %201 = vmatmul.bf16.vlgmr.msra.gmra.mxu0 %v866_v8  ;;  %221 = vmatmul.bf16.vlgmr.msra.gmra.mxu2 %v870_v9 }
  0x2f   :  { %321 = vmatpush.bf16.msra.mxu1 %v882_v23  ;;  %905 = vmatpush.bf16.msra.mxu3 %v882_v23 }
  0x3e   :  { %206 = vmatmul.bf16.gmra.mxu0 %v867_v10  ;;  %226 = vmatmul.bf16.gmra.mxu2 %v871_v11 }
  0x4e   :  { %211 = vmatmul.bf16.gmra.mxu0 %v868_v16  ;;  %231 = vmatmul.bf16.gmra.mxu2 %v872_v17 }
  0x5e   :  { %216 = vmatmul.bf16.gmra.mxu0 %v869_v19  ;;  %236 = vmatmul.bf16.gmra.mxu2 %v873_v20 }
  0xab   :  { %v202_v24 = vpop.f32.mrf.mxu0 }
  0xb1   :  { %v222_v25 = vpop.f32.mrf.mxu2 }
  0xb3   :  { %v204_v26 = vpop.f32.mrf.mxu0 }
  0xb4   :  { %v242_v27 = vpack.c.bf16 %v204_v26, %v202_v24 }
  0xb6   :  { %322 = vmatmul.bf16.vlgmr.msra.gmra.mxu1 %v242_v27 }
  0xb9   :  { %v224_v28 = vpop.f32.mrf.mxu2 }
  0xba   :  { %v246_v29 = vpack.c.bf16 %v224_v28, %v222_v25 }
  0xbb   :  { %v207_v30 = vpop.f32.mrf.mxu0 }
  0xbc   :  { %342 = vmatmul.bf16.vlgmr.msra.gmra.mxu3 %v246_v29 }
  0xc1   :  { %v227_v31 = vpop.f32.mrf.mxu2 }
  0xc3   :  { %v209_v32 = vpop.f32.mrf.mxu0 }
  0xc4   :  { %v243_v33 = vpack.c.bf16 %v209_v32, %v207_v30 }
  0xc6   :  { %327 = vmatmul.bf16.gmra.mxu1 %v243_v33 }
  0xc9   :  { %v229_v34 = vpop.f32.mrf.mxu2 }
  0xca   :  { %v247_v35 = vpack.c.bf16 %v229_v34, %v227_v31 }
  0xcb   :  { %v212_v36 = vpop.f32.mrf.mxu0 }
  0xcc   :  { %347 = vmatmul.bf16.gmra.mxu3 %v247_v35 }
  0xd1   :  { %v232_v37 = vpop.f32.mrf.mxu2 }
  0xd3   :  { %v214_v38 = vpop.f32.mrf.mxu0 }
  0xd4   :  { %v244_v39 = vpack.c.bf16 %v214_v38, %v212_v36 }
  0xd6   :  { %332 = vmatmul.bf16.gmra.mxu1 %v244_v39 }
  0xd9   :  { %v234_v40 = vpop.f32.mrf.mxu2 }
  0xda   :  { %v248_v41 = vpack.c.bf16 %v234_v40, %v232_v37 }
  0xdb   :  { %v217_v42 = vpop.f32.mrf.mxu0 }
  0xdc   :  { %352 = vmatmul.bf16.gmra.mxu3 %v248_v41 }
  0xe1   :  { %v237_v43 = vpop.f32.mrf.mxu2 }
  0xe3   :  { %v219_v44 = vpop.f32.mrf.mxu0 }
  0xe4   :  { %v245_v45 = vpack.c.bf16 %v219_v44, %v217_v42 }
  0xe6   :  { %337 = vmatmul.bf16.gmra.mxu1 %v245_v45 }
  0xe9   :  { %v239_v46 = vpop.f32.mrf.mxu2 }
  0xea   :  { %v249_v47 = vpack.c.bf16 %v239_v46, %v237_v43 }
  0xec   :  { %357 = vmatmul.bf16.gmra.mxu3 %v249_v47 }
 0x133   :  { %v323_v51 = vpop.f32.mrf.mxu1 }
 0x134   :  { %v365_v52 = vmul.f32 %v1125_v49, %v323_v51 }
 0x136   :  { %v1131_v53 = vadd.f32 %v1127_v50, %v365_v52 }
 0x138   :  { %v850_v54 = vmul.f32 -1.442695, %v1131_v53 }
 0x13a   :  { %914 = vpow2.f32 %v850_v54 }
 0x13b   :  { %v325_v55 = vpop.f32.mrf.mxu1 }
 0x13c   :  { %v366_v56 = vmul.f32 %v1125_v49, %v325_v55 }
 0x13e   :  { %v1136_v57 = vadd.f32 %v1127_v50, %v366_v56 }
 0x13f   :  { %v343_v58 = vpop.f32.mrf.mxu3 }
 0x140   :  { %v915_v59 = vpop.eup %914  ;;  %v851_v60 = vmul.f32 -1.442695, %v1136_v57  ;;  %v373_v61 = vmul.f32 %v1125_v49, %v343_v58 }
 0x141   :  { %v446_v62 = vadd.f32 1.0, %v915_v59 }
 0x142   :  { %916 = vpow2.f32 %v851_v60  ;;  %v1141_v63 = vadd.f32 %v1127_v50, %v373_v61 }
 0x143   :  { %918 = vrcp.f32 %v446_v62  ;;  %v328_v0 = vpop.f32.mrf.mxu1  ;;  %v471_v15 = vand.u32 2147483647, %v446_v62  ;;  %v473_v18 = vand.u32 2147483648, %v446_v62  ;;  %vm467_vm1 = vweird.f32 %v446_v62 }
 0x144   :  { %v858_v1 = vmul.f32 -1.442695, %v1141_v63  ;;  %v367_v2 = vmul.f32 %v1125_v49, %v328_v0 }
 0x145   :  { %vm472_vm2 = vcmp.eq.f32.partialorder %v471_v15, 8.507059e+37  ;;  %v474_v27 = vor.u32 1.1754944e-38, %v473_v18 }
 0x146   :  { %920 = vpow2.f32 %v858_v1  ;;  %v1146_v3 = vadd.f32 %v1127_v50, %v367_v2 }
 0x147   :  { %v345_v4 = vpop.f32.mrf.mxu3 }
 0x148   :  { %v917_v5 = vpop.eup %916  ;;  %v852_v6 = vmul.f32 -1.442695, %v1146_v3  ;;  %v374_v7 = vmul.f32 %v1125_v49, %v345_v4 }
 0x149   :  { %v919_v8 = vpop.eup %918  ;;  %v1150_v9 = vadd.f32 1.0, %v917_v5 }
 0x14a   :  { %v463_v10 = vmul.f32 %v919_v8, %v446_v62  ;;  %922 = vpow2.f32 %v852_v6  ;;  %v1153_v11 = vadd.f32 %v1127_v50, %v374_v7  ;;  %vm468_vm0 = vweird.f32 %v919_v8 }
 0x14b   :  { %924 = vrcp.f32 %v1150_v9  ;;  %v330_v12 = vpop.f32.mrf.mxu1  ;;  %vm469_vm3 = vmor %vm467_vm1, %vm468_vm0  ;;  %v486_v28 = vand.u32 2147483647, %v1150_v9  ;;  %v488_v33 = vand.u32 2147483648, %v1150_v9  ;;  %vm482_vm4 = vweird.f32 %v1150_v9 }
 0x14c   :  { %v921_v13 = vpop.eup %920  ;;  %v464_v14 = vsub.f32 1.0, %v463_v10  ;;  %v859_v16 = vmul.f32 -1.442695, %v1153_v11  ;;  %v368_v17 = vmul.f32 %v1125_v49, %v330_v12 }
 0x14d   :  { %v1158_v19 = vadd.f32 1.0, %v921_v13  ;;  %vm1175_vm5 = vcmp.eq.f32.partialorder %v486_v28, 8.507059e+37  ;;  %v489_v46 = vor.u32 1.1754944e-38, %v488_v33 }
 0x14e   :  { %v465_v20 = vmul.f32 %v919_v8, %v464_v14  ;;  %926 = vpow2.f32 %v859_v16  ;;  %v1161_v21 = vadd.f32 %v1127_v50, %v368_v17 }
 0x14f   :  { %928 = vrcp.f32 %v1158_v19  ;;  %v348_v22 = vpop.f32.mrf.mxu3  ;;  %v591_v35 = vand.u32 2147483647, %v1158_v19  ;;  %vm587_vm7 = vweird.f32 %v1158_v19  ;;  %v593_v51 = vand.u32 2147483648, %v1158_v19 }
 0x150   :  { %v923_v23 = vpop.eup %922  ;;  %v466_v24 = vadd.f32 %v919_v8, %v465_v20  ;;  %v853_v25 = vmul.f32 -1.442695, %v1161_v21  ;;  %v375_v30 = vmul.f32 %v1125_v49, %v348_v22 }
 0x151   :  { %v925_v26 = vpop.eup %924  ;;  %v1166_v29 = vadd.f32 1.0, %v923_v23  ;;  %vm1187_vm8 = vcmp.eq.f32.partialorder %v591_v35, 8.507059e+37  ;;  %v594_v6 = vor.u32 1.1754944e-38, %v593_v51 }
 0x152   :  { %v470_v31 = vsel %vm469_vm3, %v919_v8, %v466_v24  ;;  %v478_v32 = vmul.f32 %v925_v26, %v1150_v9  ;;  %930 = vpow2.f32 %v853_v25  ;;  %v1182_v43 = vadd.f32 %v1127_v50, %v375_v30 }
 0x153   :  { %v475_v34 = vsel %vm472_vm2, %v474_v27, %v470_v31  ;;  %932 = vrcp.f32 %v1166_v29  ;;  %v333_v36 = vpop.f32.mrf.mxu1  ;;  %vm483_vm6 = vweird.f32 %v925_v26  ;;  %v501_v56 = vand.u32 2147483647, %v1166_v29 }
 0x154   :  { %v927_v37 = vpop.eup %926  ;;  %v702_v38 = vmul.f32 %v475_v34, %v1131_v53  ;;  %v479_v39 = vsub.f32 1.0, %v478_v32  ;;  %v369_v44 = vmul.f32 %v1125_v49, %v333_v36  ;;  %v503_v58 = vand.u32 2147483648, %v1166_v29  ;;  %vm484_vm9 = vmor %vm482_vm4, %vm483_vm6 }
 0x155   :  { %v929_v40 = vpop.eup %928  ;;  %v1179_v42 = vadd.f32 1.0, %v927_v37  ;;  %v860_v61 = vmul.f32 -1.442695, %v1182_v43  ;;  %vm497_vm11 = vweird.f32 %v1166_v29  ;;  %vm1210_vm12 = vcmp.eq.f32.partialorder %v501_v56, 8.507059e+37 }
 0x156   :  { %718 = vst [vmem:[#allocation8] sm:$0xff] %v702_v38  ;;  %v480_v45 = vmul.f32 %v925_v26, %v479_v39  ;;  %v583_v47 = vmul.f32 %v929_v40, %v1158_v19  ;;  %v1201_v62 = vadd.f32 %v1127_v50, %v369_v44  ;;  %vm588_vm10 = vweird.f32 %v929_v40 }
 0x157   :  { %934 = vrcp.f32 %v1179_v42  ;;  %v350_v52 = vpop.f32.mrf.mxu3  ;;  %vm589_vm13 = vmor %vm587_vm7, %vm588_vm10  ;;  %v504_v14 = vor.u32 1.1754944e-38, %v503_v58  ;;  %v606_v22 = vand.u32 2147483647, %v1179_v42  ;;  %vm602_vm0 = vweird.f32 %v1179_v42 }
 0x158   :  { %v931_v53 = vpop.eup %930  ;;  %v481_v54 = vadd.f32 %v925_v26, %v480_v45  ;;  %v584_v55 = vsub.f32 1.0, %v583_v47  ;;  %v376_v0 = vmul.f32 %v1125_v49, %v350_v52  ;;  %v854_v15 = vmul.f32 -1.442695, %v1201_v62 }
 0x159   :  { %v933_v59 = vpop.eup %932  ;;  %v1197_v60 = vadd.f32 1.0, %v931_v53  ;;  %v608_v30 = vand.u32 2147483648, %v1179_v42  ;;  %vm1235_vm2 = vcmp.eq.f32.partialorder %v606_v22, 8.507059e+37 }
 0x15a   :  { %v485_v1 = vsel %vm484_vm9, %v925_v26, %v481_v54  ;;  %v585_v2 = vmul.f32 %v929_v40, %v584_v55  ;;  %v493_v4 = vmul.f32 %v933_v59, %v1166_v29  ;;  %v1218_v16 = vadd.f32 %v1127_v50, %v376_v0 }
 0x15b   :  { %v490_v5 = vsel %vm1175_vm5, %v489_v46, %v485_v1  ;;  %936 = vrcp.f32 %v1197_v60  ;;  %v335_v7 = vpop.f32.mrf.mxu1  ;;  %vm498_vm14 = vweird.f32 %v933_v59  ;;  %v609_v45 = vor.u32 1.1754944e-38, %v608_v30 }
 0x15c   :  { %v703_v8 = vmul.f32 %v490_v5, %v1136_v57  ;;  %v586_v9 = vadd.f32 %v929_v40, %v585_v2  ;;  %v494_v10 = vsub.f32 1.0, %v493_v4  ;;  %938 = vpow2.f32 %v860_v61  ;;  %vm499_vm15 = vmor %vm497_vm11, %vm498_vm14 }
 0x15d   :  { %v935_v13 = vpop.eup %934  ;;  %940 = vpow2.f32 %v854_v15  ;;  %v861_v19 = vmul.f32 -1.442695, %v1218_v16  ;;  %v370_v27 = vmul.f32 %v1125_v49, %v335_v7  ;;  %v516_v46 = vand.u32 2147483647, %v1197_v60 }
 0x15e   :  { %719 = vst [vmem:[#allocation8 + $0x8] sm:$0xff] %v703_v8  ;;  %v590_v17 = vsel %vm589_vm13, %v929_v40, %v586_v9  ;;  %v495_v57 = vmul.f32 %v933_v59, %v494_v10  ;;  %v598_v18 = vmul.f32 %v935_v13, %v1179_v42  ;;  %vm603_vm1 = vweird.f32 %v935_v13 }
 0x15f   :  { %v595_v20 = vsel %vm1187_vm8, %v594_v6, %v590_v17  ;;  %v353_v23 = vpop.f32.mrf.mxu3  ;;  %942 = vpow2.f32 %v861_v19  ;;  %v1240_v36 = vadd.f32 %v1127_v50, %v370_v27  ;;  %vm604_vm3 = vmor %vm602_vm0, %vm603_vm1  ;;  %v518_v47 = vand.u32 2147483648, %v1197_v60 }
 0x160   :  { %v710_v24 = vmul.f32 %v595_v20, %v1141_v63  ;;  %v496_v25 = vadd.f32 %v933_v59, %v495_v57  ;;  %v599_v26 = vsub.f32 1.0, %v598_v18  ;;  %v377_v31 = vmul.f32 %v1125_v49, %v353_v23 }
 0x161   :  { %v937_v28 = vpop.eup %936  ;;  %v855_v48 = vmul.f32 -1.442695, %v1240_v36  ;;  %vm512_vm5 = vweird.f32 %v1197_v60  ;;  %vm517_vm7 = vcmp.eq.f32.partialorder %v516_v46, 8.507059e+37  ;;  %v519_v0 = vor.u32 1.1754944e-38, %v518_v47 }
 0x162   :  { %726 = vst [vmem:[#allocation8 + $0x40] sm:$0xff] %v710_v24  ;;  %v500_v32 = vsel %vm499_vm15, %v933_v59, %v496_v25  ;;  %v600_v33 = vmul.f32 %v935_v13, %v599_v26  ;;  %v508_v63 = vmul.f32 %v937_v28, %v1197_v60  ;;  %v939_v34 = vpop.eup %938  ;;  %v1243_v37 = vadd.f32 %v1127_v50, %v377_v31 }
 0x163   :  { %v505_v35 = vsel %vm1210_vm12, %v504_v14, %v500_v32  ;;  %v1246_v41 = vadd.f32 1.0, %v939_v34  ;;  %v941_v44 = vpop.eup %940  ;;  %v338_v51 = vpop.f32.mrf.mxu1  ;;  %vm513_vm4 = vweird.f32 %v937_v28 }
 0x164   :  { %v704_v38 = vmul.f32 %v505_v35, %v1146_v3  ;;  %v601_v39 = vadd.f32 %v935_v13, %v600_v33  ;;  %v509_v40 = vsub.f32 1.0, %v508_v63  ;;  %v1257_v42 = vadd.f32 1.0, %v941_v44  ;;  %vm514_vm6 = vmor %vm512_vm5, %vm513_vm4 }
 0x165   :  { %944 = vrcp.f32 %v1246_v41  ;;  %v943_v3 = vpop.eup %942  ;;  %v862_v55 = vmul.f32 -1.442695, %v1243_v37  ;;  %v621_v1 = vand.u32 2147483647, %v1246_v41  ;;  %v623_v2 = vand.u32 2147483648, %v1246_v41 }
 0x166   :  { %720 = vst [vmem:[#allocation8 + $0x10] sm:$0xff] %v704_v38  ;;  %v605_v52 = vsel %vm604_vm3, %v935_v13, %v601_v39  ;;  %v510_v53 = vmul.f32 %v937_v28, %v509_v40  ;;  %v1261_v61 = vadd.f32 1.0, %v943_v3  ;;  %946 = vpow2.f32 %v855_v48 }
 0x167   :  { %v610_v54 = vsel %vm1235_vm2, %v609_v45, %v605_v52  ;;  %v355_v56 = vpop.f32.mrf.mxu3  ;;  %948 = vrcp.f32 %v1257_v42  ;;  %v371_v4 = vmul.f32 %v1125_v49, %v338_v51  ;;  %vm617_vm8 = vweird.f32 %v1246_v41 }
 0x168   :  { %v711_v58 = vmul.f32 %v610_v54, %v1153_v11  ;;  %v511_v59 = vadd.f32 %v937_v28, %v510_v53  ;;  %950 = vrcp.f32 %v1261_v61  ;;  %vm1271_vm9 = vcmp.eq.f32.partialorder %v621_v1, 8.507059e+37 }
 0x169   :  { %952 = vpow2.f32 %v862_v55  ;;  %v624_v10 = vor.u32 1.1754944e-38, %v623_v2  ;;  %vm527_vm10 = vweird.f32 %v1257_v42  ;;  %v1277_v12 = vadd.f32 %v1127_v50, %v371_v4 }
 0x16a   :  { %727 = vst [vmem:[#allocation8 + $0x48] sm:$0xff] %v711_v58  ;;  %v515_v60 = vsel %vm514_vm6, %v937_v28, %v511_v59  ;;  %v378_v13 = vmul.f32 %v1125_v49, %v355_v56  ;;  %v531_v15 = vand.u32 2147483647, %v1257_v42  ;;  %v533_v17 = vand.u32 2147483648, %v1257_v42 }
 0x16b   :  { %v520_v11 = vsel %vm517_vm7, %v519_v0, %v515_v60  ;;  %v945_v5 = vpop.eup %944  ;;  %v340_v18 = vpop.f32.mrf.mxu1  ;;  %vm632_vm11 = vweird.f32 %v1261_v61  ;;  %v856_v23 = vmul.f32 -1.442695, %v1277_v12  ;;  %v636_v30 = vand.u32 2147483647, %v1261_v61 }
 0x16c   :  { %v705_v6 = vmul.f32 %v520_v11, %v1161_v21  ;;  %v613_v7 = vmul.f32 %v945_v5, %v1246_v41  ;;  %v947_v9 = vpop.eup %946  ;;  %v1288_v24 = vadd.f32 %v1127_v50, %v378_v13  ;;  %vm618_vm12 = vweird.f32 %v945_v5 }
 0x16d   :  { %v949_v21 = vpop.eup %948  ;;  %v1282_v57 = vadd.f32 1.0, %v947_v9  ;;  %v638_v31 = vand.u32 2147483648, %v1261_v61  ;;  %v372_v32 = vmul.f32 %v1125_v49, %v340_v18  ;;  %vm619_vm13 = vmor %vm617_vm8, %vm618_vm12  ;;  %vm1299_vm15 = vcmp.eq.f32.partialorder %v531_v15, 8.507059e+37 }
 0x16e   :  { %721 = vst [vmem:[#allocation8 + $0x18] sm:$0xff] %v705_v6  ;;  %v614_v14 = vsub.f32 1.0, %v613_v7  ;;  %v951_v22 = vpop.eup %950  ;;  %v523_v19 = vmul.f32 %v949_v21, %v1257_v42  ;;  %vm528_vm14 = vweird.f32 %v949_v21  ;;  %v863_v38 = vmul.f32 -1.442695, %v1288_v24 }
 0x16f   :  { %v358_v20 = vpop.f32.mrf.mxu3  ;;  %v628_v26 = vmul.f32 %v951_v22, %v1261_v61  ;;  %954 = vrcp.f32 %v1282_v57  ;;  %v953_v27 = vpop.eup %952  ;;  %vm633_vm0 = vweird.f32 %v951_v22  ;;  %v534_v46 = vor.u32 1.1754944e-38, %v533_v17  ;;  %vm529_vm2 = vmor %vm527_vm10, %vm528_vm14 }
 0x170   :  { %v615_v25 = vmul.f32 %v945_v5, %v614_v14  ;;  %v524_v28 = vsub.f32 1.0, %v523_v19  ;;  %v1295_v34 = vadd.f32 1.0, %v953_v27  ;;  %956 = vpow2.f32 %v856_v23  ;;  %vm634_vm3 = vmor %vm632_vm11, %vm633_vm0 }
 0x171   :  { %v629_v63 = vsub.f32 1.0, %v628_v26  ;;  %vm1307_vm1 = vcmp.eq.f32.partialorder %v636_v30, 8.507059e+37  ;;  %v1315_v52 = vadd.f32 %v1127_v50, %v372_v32  ;;  %v639_v3 = vor.u32 1.1754944e-38, %v638_v31 }
 0x172   :  { %v616_v33 = vadd.f32 %v945_v5, %v615_v25  ;;  %v525_v35 = vmul.f32 %v949_v21, %v524_v28  ;;  %958 = vrcp.f32 %v1295_v34  ;;  %v546_v55 = vand.u32 2147483647, %v1282_v57 }
 0x173   :  { %v630_v40 = vmul.f32 %v951_v22, %v629_v63  ;;  %960 = vpow2.f32 %v863_v38  ;;  %v548_v59 = vand.u32 2147483648, %v1282_v57  ;;  %v857_v0 = vmul.f32 -1.442695, %v1315_v52 }
 0x174   :  { %v620_v39 = vsel %vm619_vm13, %v945_v5, %v616_v33  ;;  %v526_v45 = vadd.f32 %v949_v21, %v525_v35  ;;  %v379_v5 = vmul.f32 %v1125_v49, %v358_v20  ;;  %vm542_vm5 = vweird.f32 %v1282_v57 }
 0x175   :  { %v625_v44 = vsel %vm1271_vm9, %v624_v10, %v620_v39  ;;  %v955_v47 = vpop.eup %954  ;;  %v631_v51 = vadd.f32 %v951_v22, %v630_v40  ;;  %962 = vpow2.f32 %v857_v0  ;;  %vm1336_vm6 = vcmp.eq.f32.partialorder %v546_v55, 8.507059e+37 }
 0x176   :  { %v712_v48 = vmul.f32 %v625_v44, %v1182_v43  ;;  %v530_v53 = vsel %vm529_vm2, %v949_v21, %v526_v45  ;;  %v538_v54 = vmul.f32 %v955_v47, %v1282_v57  ;;  %v957_v58 = vpop.eup %956  ;;  %vm543_vm4 = vweird.f32 %v955_v47 }
 0x177   :  { %v360_v56 = vpop.f32.mrf.mxu3  ;;  %v535_v43 = vsel %vm1299_vm15, %v534_v46, %v530_v53  ;;  %v635_v42 = vsel %vm634_vm3, %v951_v22, %v631_v51  ;;  %v1328_v2 = vadd.f32 1.0, %v957_v58  ;;  %vm544_vm7 = vmor %vm542_vm5, %vm543_vm4  ;;  %v549_v14 = vor.u32 1.1754944e-38, %v548_v59 }
 0x178   :  { %728 = vst [vmem:[#allocation8 + $0x50] sm:$0xff] %v712_v48  ;;  %v706_v1 = vmul.f32 %v535_v43, %v1201_v62  ;;  %v640_v61 = vsel %vm1307_vm1, %v639_v3, %v635_v42  ;;  %v539_v60 = vsub.f32 1.0, %v538_v54  ;;  %v959_v4 = vpop.eup %958  ;;  %v380_v6 = vmul.f32 %v1125_v49, %v360_v56 }
 0x179   :  { %v713_v11 = vmul.f32 %v640_v61, %v1218_v16  ;;  %v643_v8 = vmul.f32 %v959_v4, %v1295_v34  ;;  %964 = vrcp.f32 %v1328_v2  ;;  %v961_v62 = vpop.eup %960  ;;  %v1341_v16 = vadd.f32 %v1127_v50, %v379_v5 }
 0x17a   :  { %722 = vst [vmem:[#allocation8 + $0x20] sm:$0xff] %v706_v1  ;;  %v540_v7 = vmul.f32 %v955_v47, %v539_v60  ;;  %v1343_v13 = vadd.f32 1.0, %v961_v62  ;;  %v1346_v21 = vadd.f32 %v1127_v50, %v380_v6  ;;  %v651_v15 = vand.u32 2147483647, %v1295_v34 }
 0x17b   :  { %729 = vst [vmem:[#allocation8 + $0x58] sm:$0xff] %v713_v11  ;;  %v644_v49 = vsub.f32 1.0, %v643_v8  ;;  %v653_v17 = vand.u32 2147483648, %v1295_v34  ;;  %v864_v57 = vmul.f32 -1.442695, %v1341_v16  ;;  %vm648_vm8 = vweird.f32 %v959_v4  ;;  %v963_v22 = vpop.eup %962 }
 0x17c   :  { %v541_v10 = vadd.f32 %v955_v47, %v540_v7  ;;  %966 = vrcp.f32 %v1343_v13  ;;  %vm647_vm9 = vweird.f32 %v1295_v34  ;;  %v1356_v26 = vadd.f32 1.0, %v963_v22 }
 0x17d   :  { %v645_v20 = vmul.f32 %v959_v4, %v644_v49  ;;  %968 = vpow2.f32 %v864_v57  ;;  %v865_v27 = vmul.f32 -1.442695, %v1346_v21  ;;  %vm649_vm10 = vmor %vm647_vm9, %vm648_vm8  ;;  %v654_v28 = vor.u32 1.1754944e-38, %v653_v17 }
 0x17e   :  { %v545_v18 = vsel %vm544_vm7, %v955_v47, %v541_v10  ;;  %vm652_vm11 = vcmp.eq.f32.partialorder %v651_v15, 8.507059e+37  ;;  %970 = vrcp.f32 %v1356_v26  ;;  %v561_v63 = vand.u32 2147483647, %v1328_v2 }
 0x17f   :  { %v550_v19 = vsel %vm1336_vm6, %v549_v14, %v545_v18  ;;  %v965_v50 = vpop.eup %964  ;;  %v646_v25 = vadd.f32 %v959_v4, %v645_v20  ;;  %972 = vpow2.f32 %v865_v27  ;;  %v563_v35 = vand.u32 2147483648, %v1328_v2 }
 0x180   :  { %v707_v23 = vmul.f32 %v550_v19, %v1240_v36  ;;  %v553_v30 = vmul.f32 %v965_v50, %v1328_v2  ;;  %vm558_vm12 = vweird.f32 %v965_v50  ;;  %vm557_vm13 = vweird.f32 %v1328_v2 }
 0x181   :  { %v650_v31 = vsel %vm649_vm10, %v959_v4, %v646_v25  ;;  %vm562_vm14 = vcmp.eq.f32.partialorder %v561_v63, 8.507059e+37  ;;  %vm559_vm15 = vmor %vm557_vm13, %vm558_vm12  ;;  %v564_v41 = vor.u32 1.1754944e-38, %v563_v35  ;;  %v666_v47 = vand.u32 2147483647, %v1343_v13 }
 0x182   :  { %723 = vst [vmem:[#allocation8 + $0x28] sm:$0xff] %v707_v23  ;;  %v655_v32 = vsel %vm652_vm11, %v654_v28, %v650_v31  ;;  %v554_v33 = vsub.f32 1.0, %v553_v30  ;;  %v967_v36 = vpop.eup %966  ;;  %vm662_vm1 = vweird.f32 %v1343_v13  ;;  %v578_v59 = vand.u32 2147483648, %v1356_v26 }
 0x183   :  { %v714_v34 = vmul.f32 %v655_v32, %v1243_v37  ;;  %v969_v29 = vpop.eup %968  ;;  %v658_v39 = vmul.f32 %v967_v36, %v1343_v13  ;;  %v668_v37 = vand.u32 2147483648, %v1343_v13  ;;  %vm663_vm0 = vweird.f32 %v967_v36 }
 0x184   :  { %v555_v38 = vmul.f32 %v965_v50, %v554_v33  ;;  %v460_v40 = vadd.f32 1.0, %v969_v29  ;;  %v971_v46 = vpop.eup %970  ;;  %vm664_vm2 = vmor %vm662_vm1, %vm663_vm0  ;;  %vm667_vm3 = vcmp.eq.f32.partialorder %v666_v47, 8.507059e+37  ;;  %v576_v61 = vand.u32 2147483647, %v1356_v26 }
 0x185   :  { %730 = vst [vmem:[#allocation8 + $0x60] sm:$0xff] %v714_v34  ;;  %v659_v45 = vsub.f32 1.0, %v658_v39  ;;  %v973_v48 = vpop.eup %972  ;;  %v568_v3 = vmul.f32 %v971_v46, %v1356_v26  ;;  %v669_v42 = vor.u32 1.1754944e-38, %v668_v37  ;;  %vm573_vm4 = vweird.f32 %v971_v46 }
 0x186   :  { %v556_v44 = vadd.f32 %v965_v50, %v555_v38  ;;  %974 = vrcp.f32 %v460_v40  ;;  %v461_v55 = vadd.f32 1.0, %v973_v48  ;;  %vm572_vm5 = vweird.f32 %v1356_v26 }
 0x187   :  { %v660_v53 = vmul.f32 %v967_v36, %v659_v45  ;;  %v569_v43 = vsub.f32 1.0, %v568_v3  ;;  %vm574_vm6 = vmor %vm572_vm5, %vm573_vm4  ;;  %v579_v5 = vor.u32 1.1754944e-38, %v578_v59  ;;  %vm577_vm7 = vcmp.eq.f32.partialorder %v576_v61, 8.507059e+37 }
 0x188   :  { %v560_v51 = vsel %vm559_vm15, %v965_v50, %v556_v44  ;;  %976 = vrcp.f32 %v461_v55  ;;  %v681_v9 = vand.u32 2147483647, %v460_v40  ;;  %v683_v10 = vand.u32 2147483648, %v460_v40 }
 0x189   :  { %v565_v54 = vsel %vm562_vm14, %v564_v41, %v560_v51  ;;  %v661_v58 = vadd.f32 %v967_v36, %v660_v53  ;;  %v570_v1 = vmul.f32 %v971_v46, %v569_v43  ;;  %vm677_vm9 = vweird.f32 %v460_v40 }
 0x18a   :  { %v708_v56 = vmul.f32 %v565_v54, %v1277_v12  ;;  %vm682_vm11 = vcmp.eq.f32.partialorder %v681_v9, 8.507059e+37  ;;  %v684_v17 = vor.u32 1.1754944e-38, %v683_v10  ;;  %v698_v57 = vand.u32 2147483648, %v461_v55 }
 0x18b   :  { %v665_v0 = vsel %vm664_vm2, %v967_v36, %v661_v58  ;;  %v571_v4 = vadd.f32 %v971_v46, %v570_v1  ;;  %v696_v22 = vand.u32 2147483647, %v461_v55  ;;  %vm692_vm13 = vweird.f32 %v461_v55 }
 0x18c   :  { %724 = vst [vmem:[#allocation8 + $0x30] sm:$0xff] %v708_v56  ;;  %v975_v60 = vpop.eup %974  ;;  %v670_v2 = vsel %vm667_vm3, %v669_v42, %v665_v0 }
 0x18d   :  { %v715_v12 = vmul.f32 %v670_v2, %v1288_v24  ;;  %v673_v11 = vmul.f32 %v975_v60, %v460_v40  ;;  %v575_v6 = vsel %vm574_vm6, %v971_v46, %v571_v4  ;;  %vm678_vm8 = vweird.f32 %v975_v60 }
 0x18e   :  { %v977_v8 = vpop.eup %976  ;;  %v580_v62 = vsel %vm577_vm7, %v579_v5, %v575_v6  ;;  %vm679_vm10 = vmor %vm677_vm9, %vm678_vm8  ;;  %vm697_vm15 = vcmp.eq.f32.partialorder %v696_v22, 8.507059e+37 }
 0x18f   :  { %731 = vst [vmem:[#allocation8 + $0x68] sm:$0xff] %v715_v12  ;;  %v674_v7 = vsub.f32 1.0, %v673_v11  ;;  %v709_v49 = vmul.f32 %v580_v62, %v1315_v52  ;;  %v688_v14 = vmul.f32 %v977_v8, %v461_v55  ;;  %vm693_vm12 = vweird.f32 %v977_v8 }
 0x190   :  { %vm694_vm14 = vmor %vm692_vm13, %vm693_vm12  ;;  %v699_v52 = vor.u32 1.1754944e-38, %v698_v57 }
 0x191   :  { %v675_v13 = vmul.f32 %v975_v60, %v674_v7  ;;  %725 = vst [vmem:[#allocation8 + $0x38] sm:$0xff] %v709_v49  ;;  %v689_v15 = vsub.f32 1.0, %v688_v14 }
 0x193   :  { %v676_v24 = vadd.f32 %v975_v60, %v675_v13  ;;  %v690_v20 = vmul.f32 %v977_v8, %v689_v15 }
 0x195   :  { %v680_v18 = vsel %vm679_vm10, %v975_v60, %v676_v24  ;;  %v691_v23 = vadd.f32 %v977_v8, %v690_v20 }
 0x196   :  { %v685_v19 = vsel %vm682_vm11, %v684_v17, %v680_v18 }
 0x197   :  { %v716_v50 = vmul.f32 %v685_v19, %v1341_v16  ;;  %v695_v25 = vsel %vm694_vm14, %v977_v8, %v691_v23 }
 0x198   :  { %v700_v26 = vsel %vm697_vm15, %v699_v52, %v695_v25 }
 0x199   :  { %732 = vst [vmem:[#allocation8 + $0x70] sm:$0xff] %v716_v50  ;;  %v717_v27 = vmul.f32 %v700_v26, %v1346_v21 }
 0x19b   :  { %733 = vst [vmem:[#allocation8 + $0x78] sm:$0xff] %v717_v27 }
 0x19c   :  { %746 = dma.vmem_to_hbm [thread:$0]  %s739_s5, 2048, %s741_s8, [#allocation4], %s1086_s9, %s1086_s9, %s1087_s10  }
 0x19d   :  { %1078 = dma.done.wait [#allocation4], 2048  }
 0x19e   :  { %1079 = vsyncadd [#allocation4], 4294965248 }
 0x19f   :  { %751 = vsyncpa [#allocation3], 1 }
 0x1a0   :  { %752 = vsyncpa [#allocation6], 1 }
 0x1a1   :  { %753 = vsyncpa [#allocation4], 1 }

</bundles_post_ra>
